<compile_context>
chip_gen: v5e
topology: v5e:2x2
jax: 0.10.0
libtpu: 0.0.40
codegen_flags: <defaults>
</compile_context>

<pallas_src>
import functools

import jax
import jax.numpy as jnp
from jax.experimental import pallas as pl
from jax.experimental.pallas import tpu as pltpu


def _round_up(x, m):
    return ((x + m - 1) // m) * m


def _q_mlp_kernel(x_ref, w1_ref, b1_ref, w2_ref, b2_ref, w3_ref, b3_ref, o_ref):
    # fc1 + ReLU  (MXU matmul, f32 accumulate; bias/ReLU in f32 on the VPU)
    h1 = jnp.dot(x_ref[...], w1_ref[...], preferred_element_type=jnp.float32)
    h1 = jnp.maximum(h1 + b1_ref[...], 0.0)
    # fc2 + ReLU
    h2 = jnp.dot(h1.astype(w2_ref.dtype), w2_ref[...],
                 preferred_element_type=jnp.float32)
    h2 = jnp.maximum(h2 + b2_ref[...], 0.0)
    # fc3 (no activation)
    out = jnp.dot(h2.astype(w3_ref.dtype), w3_ref[...],
                  preferred_element_type=jnp.float32)
    o_ref[...] = (out + b3_ref[...]).astype(o_ref.dtype)


def _default_use_bf16():
    """bf16 streaming on v6e/v7x (native bf16 VPU/MXU); f32 on v5e and older."""
    try:
        kind = jax.devices()[0].device_kind.lower()
    except Exception:
        return False
    if "tpu" not in kind:
        return False
    for old in ("v2", "v3", "v4", "v5"):
        if old in kind:
            return False
    return True


def _pick_tb(batch, max_tb, row_mult):
    """Batch tile.

    Goals: (a) big tiles to amortize per-grid-step overhead, (b) >= 2 roughly
    equal grid steps once the batch is large enough so the "parallel" batch
    axis uses both TensorCores on v7x, (c) rows rounded to the sublane packing
    multiple (8 for f32, 16 for bf16) to avoid packed relayouts.
    """
    if batch <= 256:
        return max(row_mult, _round_up(batch, row_mult))
    steps = max(2, pl.cdiv(batch, max_tb))
    if steps % 2:
        steps += 1  # even step count -> balanced split across 2 TCs
    return _round_up(pl.cdiv(batch, steps), row_mult)


@functools.partial(jax.jit, static_argnames=("use_bf16", "max_tb"))
def q_forward(state, params, *, use_bf16=None, max_tb=2048):
    """state: (B, state_space). params: dict of (w1,b1,w2,b2,w3,b3).

    Returns (B, action_space) f32, same semantics as the PyTorch module.
    use_bf16=None -> bf16 streaming on v6e/v7x, f32 on v5e.
    """
    w1, b1, w2, b2, w3, b3 = (params["w1"], params["b1"], params["w2"],
                              params["b2"], params["w3"], params["b3"])
    B, S = state.shape
    L1, L2, A = w1.shape[1], w2.shape[1], w3.shape[1]

    if use_bf16 is None:
        use_bf16 = _default_use_bf16()
    mxu_dtype = jnp.bfloat16 if use_bf16 else jnp.float32
    row_mult = 16 if use_bf16 else 8

    TB = _pick_tb(B, max_tb, row_mult)
    grid = (pl.cdiv(B, TB),)

    # Streamed operand (x) and resident weights in the MXU dtype; biases stay
    # f32 (added to the f32 accumulator).  Passing bf16 state directly avoids
    # the cast pass on v6e/v7x.
    x = state.astype(mxu_dtype)
    w1c, w2c, w3c = (w.astype(mxu_dtype) for w in (w1, w2, w3))
    b1c, b2c, b3c = (b.astype(jnp.float32) for b in (b1, b2, b3))

    # Unpadded feature dims: last dims equal the full array dims (legal even
    # when not multiples of 128).  Only the batch axis is tiled.
    x_spec = pl.BlockSpec((TB, S), lambda i: (i, 0))
    out_spec = pl.BlockSpec((TB, A), lambda i: (i, 0))
    # Constant index map -> weights/biases stay VMEM-resident across all steps.
    const = lambda arr: pl.BlockSpec(arr.shape, lambda i: (0,) * arr.ndim)

    itemsize = 2 if use_bf16 else 4
    weight_bytes = (sum(int(w.size) for w in (w1c, w2c, w3c)) * itemsize
                    + sum(int(b.size) for b in (b1c, b2c, b3c)) * 4)
    cost = pl.CostEstimate(
        flops=2 * B * (S * L1 + L1 * L2 + L2 * A),
        transcendentals=0,
        bytes_accessed=B * S * itemsize + weight_bytes + B * A * 4,
    )

    return pl.pallas_call(
        _q_mlp_kernel,
        out_shape=jax.ShapeDtypeStruct((B, A), jnp.float32),
        grid=grid,
        in_specs=[x_spec, const(w1c), const(b1c), const(w2c), const(b2c),
                  const(w3c), const(b3c)],
        out_specs=out_spec,
        cost_estimate=cost,
        compiler_params=pltpu.CompilerParams(
            dimension_semantics=("parallel",),   # batch tiles across TCs (v7x)
        ),
    )(x, w1c, b1c, w2c, b2c, w3c, b3c)


def init_q_params(key, state_space, l1_size, l2_size, action_space):
    """Deterministic init mirroring torch.nn.Linear default U(-1/sqrt(fan_in), +)."""
    def linear(key, fan_in, fan_out):
        kw, kb = jax.random.split(key)
        bound = 1.0 / jnp.sqrt(jnp.float32(fan_in))
        w = jax.random.uniform(kw, (fan_in, fan_out), jnp.float32, -bound, bound)
        b = jax.random.uniform(kb, (1, fan_out), jnp.float32, -bound, bound)
        return w, b

    k1, k2, k3 = jax.random.split(key, 3)
    w1, b1 = linear(k1, state_space, l1_size)
    w2, b2 = linear(k2, l1_size, l2_size)
    w3, b3 = linear(k3, l2_size, action_space)
    return {"w1": w1, "b1": b1, "w2": w2, "b2": b2, "w3": w3, "b3": b3}


def q_forward_ref(state, params):
    """Pure-JAX reference for correctness checking."""
    h = jnp.maximum(state @ params["w1"] + params["b1"], 0.0)
    h = jnp.maximum(h @ params["w2"] + params["b2"], 0.0)
    return h @ params["w3"] + params["b3"]


if __name__ == "__main__":
    # Small config consistent with the module: state_space=16, l1=32, l2=32, actions=8
    config = dict(state_space=16, l1_size=32, l2_size=32, action_space=8)

    key = jax.random.PRNGKey(0)
    kp, kx1, kx2 = jax.random.split(key, 3)
    params = init_q_params(kp, config["state_space"], config["l1_size"],
                           config["l2_size"], config["action_space"])

    # Case 1: tiny batch, forced-f32 path -> tight tolerance vs pure-JAX ref.
    state_small = jax.random.normal(kx1, (8, config["state_space"]), jnp.float32)
    out_small = jax.block_until_ready(q_forward(state_small, params, use_bf16=False))
    ref_small = q_forward_ref(state_small, params)
    assert out_small.shape == (8, config["action_space"])
    assert jnp.allclose(out_small, ref_small, atol=1e-5, rtol=1e-5), \
        "mismatch vs reference (small batch, f32)"

    # Case 2: replay-style batch (600 rows): exercises the 2-step "parallel"
    # grid and the masked partial edge block.  Uses the default dtype policy
    # (bf16 streaming on v6e/v7x, f32 on v5e) -> loose tolerance.
    state_big = jax.random.normal(kx2, (600, config["state_space"]), jnp.float32)
    out_big = jax.block_until_ready(q_forward(state_big, params))
    ref_big = q_forward_ref(state_big, params)
    assert out_big.shape == (600, config["action_space"])
    assert jnp.allclose(out_big, ref_big, atol=5e-2, rtol=5e-2), \
        "mismatch vs reference (batched, default dtype policy)"

    # Same batched case on the forced-f32 path at tight tolerance.
    out_big_f32 = jax.block_until_ready(q_forward(state_big, params, use_bf16=False))
    assert jnp.allclose(out_big_f32, ref_big, atol=1e-5, rtol=1e-5), \
        "mismatch vs reference (batched, f32)"

    print("KERNEL_OK")
</pallas_src>

<mosaic_0001>
module attributes {stable_mosaic.version = 11 : i64} {
  func.func @_q_mlp_kernel(%arg0: i32, %arg1: memref<8x16xf32, #tpu.memory_space<vmem>>, %arg2: memref<16x32xf32, #tpu.memory_space<vmem>>, %arg3: memref<1x32xf32, #tpu.memory_space<vmem>>, %arg4: memref<32x32xf32, #tpu.memory_space<vmem>>, %arg5: memref<1x32xf32, #tpu.memory_space<vmem>>, %arg6: memref<32x8xf32, #tpu.memory_space<vmem>>, %arg7: memref<1x8xf32, #tpu.memory_space<vmem>>, %arg8: memref<8x8xf32, #tpu.memory_space<vmem>>) attributes {dimension_semantics = [#tpu.dimension_semantics<parallel>], iteration_bounds = array<i64: 1>, scalar_prefetch = 0 : i64, scratch_operands = 0 : i64, tpu.core_type = #tpu.core_type<tc>, window_params = [{transform_indices = @transform_0, window_bounds = array<i64: 8, 16>}, {pipeline_mode = #tpu.pipeline_mode<synchronous>, transform_indices = @transform_1, window_bounds = array<i64: 16, 32>}, {pipeline_mode = #tpu.pipeline_mode<synchronous>, transform_indices = @transform_2, window_bounds = array<i64: 1, 32>}, {pipeline_mode = #tpu.pipeline_mode<synchronous>, transform_indices = @transform_3, window_bounds = array<i64: 32, 32>}, {pipeline_mode = #tpu.pipeline_mode<synchronous>, transform_indices = @transform_4, window_bounds = array<i64: 1, 32>}, {pipeline_mode = #tpu.pipeline_mode<synchronous>, transform_indices = @transform_5, window_bounds = array<i64: 32, 8>}, {pipeline_mode = #tpu.pipeline_mode<synchronous>, transform_indices = @transform_6, window_bounds = array<i64: 1, 8>}, {transform_indices = @transform_7, window_bounds = array<i64: 8, 8>}]} {
    %c0 = arith.constant 0 : index
    %c0_0 = arith.constant 0 : index
    %0 = vector.load %arg1[%c0, %c0_0] : memref<8x16xf32, #tpu.memory_space<vmem>>, vector<8x16xf32>
    %c0_1 = arith.constant 0 : index
    %c0_2 = arith.constant 0 : index
    %1 = vector.load %arg2[%c0_1, %c0_2] : memref<16x32xf32, #tpu.memory_space<vmem>>, vector<16x32xf32>
    %cst = arith.constant dense<0.000000e+00> : vector<8x32xf32>
    %2 = tpu.matmul %0, %1, %cst {dimension_numbers = #tpu.dot_dimension_numbers<[1], [0], [0], [1], [0, 0, 1, 1], [], []>} : vector<8x16xf32>, vector<16x32xf32>, vector<8x32xf32> -> vector<8x32xf32>
    %c0_3 = arith.constant 0 : index
    %c0_4 = arith.constant 0 : index
    %3 = vector.load %arg3[%c0_3, %c0_4] : memref<1x32xf32, #tpu.memory_space<vmem>>, vector<1x32xf32>
    %4 = vector.broadcast %3 : vector<1x32xf32> to vector<8x32xf32>
    %5 = arith.addf %2, %4 : vector<8x32xf32>
    %cst_5 = arith.constant 0.000000e+00 : f32
    %6 = vector.broadcast %cst_5 : f32 to vector<8x32xf32>
    %7 = arith.maximumf %5, %6 : vector<8x32xf32>
    %c0_6 = arith.constant 0 : index
    %c0_7 = arith.constant 0 : index
    %8 = vector.load %arg4[%c0_6, %c0_7] : memref<32x32xf32, #tpu.memory_space<vmem>>, vector<32x32xf32>
    %cst_8 = arith.constant dense<0.000000e+00> : vector<8x32xf32>
    %9 = tpu.matmul %7, %8, %cst_8 {dimension_numbers = #tpu.dot_dimension_numbers<[1], [0], [0], [1], [0, 0, 1, 1], [], []>} : vector<8x32xf32>, vector<32x32xf32>, vector<8x32xf32> -> vector<8x32xf32>
    %c0_9 = arith.constant 0 : index
    %c0_10 = arith.constant 0 : index
    %10 = vector.load %arg5[%c0_9, %c0_10] : memref<1x32xf32, #tpu.memory_space<vmem>>, vector<1x32xf32>
    %11 = vector.broadcast %10 : vector<1x32xf32> to vector<8x32xf32>
    %12 = arith.addf %9, %11 : vector<8x32xf32>
    %cst_11 = arith.constant 0.000000e+00 : f32
    %13 = vector.broadcast %cst_11 : f32 to vector<8x32xf32>
    %14 = arith.maximumf %12, %13 : vector<8x32xf32>
    %c0_12 = arith.constant 0 : index
    %c0_13 = arith.constant 0 : index
    %15 = vector.load %arg6[%c0_12, %c0_13] : memref<32x8xf32, #tpu.memory_space<vmem>>, vector<32x8xf32>
    %cst_14 = arith.constant dense<0.000000e+00> : vector<8x8xf32>
    %16 = tpu.matmul %14, %15, %cst_14 {dimension_numbers = #tpu.dot_dimension_numbers<[1], [0], [0], [1], [0, 0, 1, 1], [], []>} : vector<8x32xf32>, vector<32x8xf32>, vector<8x8xf32> -> vector<8x8xf32>
    %c0_15 = arith.constant 0 : index
    %c0_16 = arith.constant 0 : index
    %17 = vector.load %arg7[%c0_15, %c0_16] : memref<1x8xf32, #tpu.memory_space<vmem>>, vector<1x8xf32>
    %18 = vector.broadcast %17 : vector<1x8xf32> to vector<8x8xf32>
    %19 = arith.addf %16, %18 : vector<8x8xf32>
    %c0_17 = arith.constant 0 : index
    %c0_18 = arith.constant 0 : index
    %20 = vector.load %arg8[%c0_17, %c0_18] : memref<8x8xf32, #tpu.memory_space<vmem>>, vector<8x8xf32>
    tpu.vector_store %arg8[%c0_17, %c0_18], %19 {strides = array<i32>} : memref<8x8xf32, #tpu.memory_space<vmem>>, vector<8x8xf32>,
    return
  }
  func.func @transform_0(%arg0: i32) -> (i32, i32) {
    %c0_i32 = arith.constant 0 : i32
    %c0_i32_0 = arith.constant 0 : i32
    return %arg0, %c0_i32 : i32, i32
  }
  func.func @transform_1(%arg0: i32) -> (i32, i32) {
    %c0_i32 = arith.constant 0 : i32
    %c0_i32_0 = arith.constant 0 : i32
    %c0_i32_1 = arith.constant 0 : i32
    return %c0_i32, %c0_i32_0 : i32, i32
  }
  func.func @transform_2(%arg0: i32) -> (i32, i32) {
    %c0_i32 = arith.constant 0 : i32
    %c0_i32_0 = arith.constant 0 : i32
    %c0_i32_1 = arith.constant 0 : i32
    return %c0_i32, %c0_i32_0 : i32, i32
  }
  func.func @transform_3(%arg0: i32) -> (i32, i32) {
    %c0_i32 = arith.constant 0 : i32
    %c0_i32_0 = arith.constant 0 : i32
    %c0_i32_1 = arith.constant 0 : i32
    return %c0_i32, %c0_i32_0 : i32, i32
  }
  func.func @transform_4(%arg0: i32) -> (i32, i32) {
    %c0_i32 = arith.constant 0 : i32
    %c0_i32_0 = arith.constant 0 : i32
    %c0_i32_1 = arith.constant 0 : i32
    return %c0_i32, %c0_i32_0 : i32, i32
  }
  func.func @transform_5(%arg0: i32) -> (i32, i32) {
    %c0_i32 = arith.constant 0 : i32
    %c0_i32_0 = arith.constant 0 : i32
    %c0_i32_1 = arith.constant 0 : i32
    return %c0_i32, %c0_i32_0 : i32, i32
  }
  func.func @transform_6(%arg0: i32) -> (i32, i32) {
    %c0_i32 = arith.constant 0 : i32
    %c0_i32_0 = arith.constant 0 : i32
    %c0_i32_1 = arith.constant 0 : i32
    return %c0_i32, %c0_i32_0 : i32, i32
  }
  func.func @transform_7(%arg0: i32) -> (i32, i32) {
    %c0_i32 = arith.constant 0 : i32
    %c0_i32_0 = arith.constant 0 : i32
    return %arg0, %c0_i32 : i32, i32
  }
}

</mosaic_0001>

<bundles_post_ra>
// kernel: q_forward.1
= control target key start
LH: loop header
LB: loop body
LE: loop exit
PB: predicated region body
PF: predicated region fallthrough
CT: control target
= control target key end

     0   :  { %12 = vsyncpa [#allocation3], 0  ;;  %s306_s0 = inlined_call_operand.vmem [shape: f32[8,16], index: 0, kind: input, shape index: {}]   ;;  %s307_s1 = inlined_call_operand.hbm [shape: f32[16,32], index: 1, kind: input, shape index: {}]   ;;  %s308_s2 = inlined_call_operand.vmem [shape: f32[1,32], index: 2, kind: input, shape index: {}]   ;;  %s309_s3 = inlined_call_operand.vmem [shape: f32[32,32], index: 3, kind: input, shape index: {}]   ;;  %s310_s4 = inlined_call_operand.vmem [shape: f32[1,32], index: 4, kind: input, shape index: {}]   ;;  %s311_s5 = inlined_call_operand.vmem [shape: f32[32,8], index: 5, kind: input, shape index: {}]   ;;  %s312_s6 = inlined_call_operand.vmem [shape: f32[1,8], index: 6, kind: input, shape index: {}]   ;;  %s313_s7 = inlined_call_operand.hbm [shape: f32[8,8], index: 7, kind: output, shape index: {}]  }
   0x1   :  { %13 = vsyncpa [#allocation4], 0  ;;  %s20_s26 = sshll.u32 %s307_s1, 4  ;;  %s220_s27 = smov [#allocation2]   ;;  %s21_s26 = int_to_ptr.hbm [resolvable:$true] %s20_s26 }
   0x2   :  { %s22_s28 = sshll.u32 %s220_s27, 4  ;;  %s221_s29 = smov 128   ;;  %s23_s28 = int_to_ptr.vmem [resolvable:$true] %s22_s28 }
   0x3   :  { %s222_s30 = smov 8  }
   0x4   :  { %28 = dma.hbm_to_vmem [thread:$0]  %s21_s26, 256, %s23_s28, [#allocation3], %s221_s29, %s221_s29, %s222_s30  }
   0x5   :  { %216 = dma.done.wait [#allocation3], 256  }
   0x6   :  { %217 = vsyncadd [#allocation3], 4294967040  ;;  %v45_v0 = vld [vmem:[#allocation2 + $0x8] sm:$0xff]  ;;  %v44_v1 = vld [vmem:[#allocation2] sm:$0xff]  ;;  %vm50_vm0 = vcmask 130048   ;;  %vm83_vm1 = vcmask 261120  }
   0x7   :  { %68 = vmatpush.msra.mxu0 %v45_v0  ;;  %v43_v2 = vld [vmem:[%s306_s0] sm:$0xff]  ;;  %v78_v3 = vld [vmem:[%s309_s3 + $0x18] sm:$0xff]  ;;  %v77_v4 = vld [vmem:[%s309_s3 + $0x10] sm:$0xff]  ;;  %s223_s28 = smov [#allocation5]   ;;  %s148_s9 = sshll.u32 %s313_s7, 4  ;;  %vm139_vm2 = vcmask 64512   ;;  %s149_s9 = int_to_ptr.hbm [resolvable:$true] %s148_s9 }
   0x8   :  { %99 = vmatpush.msra.mxu1 %v78_v3  ;;  %v76_v5 = vld [vmem:[%s309_s3 + $0x8] sm:$0xff]  ;;  %v75_v6 = vld [vmem:[%s309_s3] sm:$0xff]  ;;  %v111_v7 = vld [vmem:[%s311_s5 + $0x18] sm:$0xff]  ;;  %s146_s29 = sshll.u32 %s223_s28, 4  ;;  %s147_s29 = int_to_ptr.vmem [resolvable:$true] %s146_s29 }
   0x9   :  { %69 = vmatpush.msra.mxu0 %v44_v1  ;;  %131 = vmatpush.msra.mxu2 %v111_v7  ;;  %v165_v8 = vld [vmem:[%s308_s2] ss:$0 sm:$0xff]  ;;  %v110_v12 = vld [vmem:[%s311_s5 + $0x10] sm:$0xff]  ;;  %v109_v13 = vld [vmem:[%s311_s5 + $0x8] sm:$0xff] }
   0xa   :  { %158 = vmatmul.msk.f32.vlgmr.msra.gmra.mxu0 %vm50_vm0, %v43_v2  ;;  %100 = vmatpush.msra.mxu1 %v77_v4  ;;  %v108_v14 = vld [vmem:[%s311_s5] sm:$0xff] }
   0xb   :  { %132 = vmatpush.msra.mxu2 %v110_v12  ;;  %v166_v15 = vld [vmem:[%s310_s4] ss:$0 sm:$0xff] }
   0xc   :  { %101 = vmatpush.msra.mxu1 %v76_v5  ;;  %v167_v19 = vld [vmem:[%s312_s6] ss:$0 sm:$0xff] }
   0xd   :  { %133 = vmatpush.msra.mxu2 %v109_v13 }
   0xe   :  { %102 = vmatpush.msra.mxu1 %v75_v6 }
   0xf   :  { %134 = vmatpush.msra.mxu2 %v108_v14 }
  0x87   :  { %v71_v9 = vpop.f32.mrf.mxu0 }
  0x88   :  { %v72_v10 = vadd.f32 %v165_v8, %v71_v9 }
  0x8a   :  { %v74_v11 = vmax.f32 %v72_v10, 0.0 }
  0x8c   :  { %159 = vmatmul.msk.f32.vlgmr.msra.gmra.mxu1 %vm83_vm1, %v74_v11 }
 0x109   :  { %v104_v16 = vpop.f32.mrf.mxu1 }
 0x10a   :  { %v105_v17 = vadd.f32 %v166_v15, %v104_v16 }
 0x10c   :  { %v107_v18 = vmax.f32 %v105_v17, 0.0 }
 0x10e   :  { %160 = vmatmul.msk.f32.vlgmr.msra.gmra.mxu2 %vm83_vm1, %v107_v18 }
 0x191   :  { %v136_v20 = vpop.f32.mrf.mxu2 }
 0x192   :  { %v137_v21 = vadd.f32 %v167_v19, %v136_v20 }
 0x194   :  { %140 = vst.msk [vmem:[#allocation5] sm:$0xff] %vm139_vm2, %v137_v21 }
 0x195   :  { %151 = dma.vmem_to_hbm [thread:$0]  %s147_s29, 128, %s149_s9, [#allocation4]  }
 0x196   :  { %218 = dma.done.wait [#allocation4], 128  }
 0x197   :  { %219 = vsyncadd [#allocation4], 4294967168 }
 0x198   :  { %156 = vsyncpa [#allocation3], 1 }
 0x199   :  { %157 = vsyncpa [#allocation4], 1 }

</bundles_post_ra>
